<compile_context>
chip_gen: v6e
topology: v6e:2x2x1
jax: 0.10.0
libtpu: 0.0.40
codegen_flags: <defaults>
</compile_context>

<pallas_src>
from functools import partial

import jax
import jax.numpy as jnp
from jax.experimental import pallas as pl
from jax.experimental.pallas import tpu as pltpu

_SUBLANE = 8          # f32 sublane width
_LANE = 128           # lane width
_MAX_BATCH_TILE = 128 # batch tile for the parallel grid


def _round_up(x: int, m: int) -> int:
    return int(pl.cdiv(x, m)) * m


# ----------------------------------------------------------------------------
# Pallas kernel: fused multi-network MLP on one batch tile.
# All fused parameters are whole-array VMEM residents (single-buffered).
# ----------------------------------------------------------------------------
def _make_multiq_kernel(num_linear: int):
    def kernel(obs_ref, *refs):
        # refs = [W0, b0, W1, b1, ..., W_last, b_last, out_ref]
        out_ref = refs[-1]
        params = refs[:-1]

        h = obs_ref[...].astype(jnp.float32)                   # (TB, obs_dim)
        for i in range(num_linear):
            w = params[2 * i][...]                             # fused (din_p, dout_p)
            b = params[2 * i + 1][...]                         # (1, dout_p), f32
            lhs = h if w.dtype == jnp.float32 else h.astype(w.dtype)
            h = jnp.dot(lhs, w, preferred_element_type=jnp.float32) + b
            if i < num_linear - 1:
                # LeakyReLU, default negative_slope = 0.01 (f32 VPU math)
                h = jnp.where(h >= 0, h, 0.01 * h)
        # output_activation = 'identity'
        out_ref[...] = h.astype(out_ref.dtype)                 # (TB, out_cols)

    return kernel


# ----------------------------------------------------------------------------
# Parameter fusion — call ONCE at init (hoisted out of the per-call path).
# ----------------------------------------------------------------------------
def _block_diag(w):
    """(K, din, dout) -> (K*din, K*dout) block-diagonal."""
    K, din, dout = w.shape
    eye = jnp.eye(K, dtype=w.dtype)
    return jnp.einsum("kl,kij->kilj", eye, w).reshape(K * din, K * dout)


def fuse_multiq_params(weights, biases, weight_dtype=jnp.float32):
    """Fuse stacked per-network params into wide, lane-padded slabs.

    weights[i]: (K, in_i, out_i)   biases[i]: (K, 1, out_i)
    Returns a dict reused by every forward / q_value call.
    """
    K, obs_dim, _ = weights[0].shape
    L = len(weights)
    A = int(weights[-1].shape[2])

    raw_out = [K * int(w.shape[2]) for w in weights]
    pad_out = [_round_up(c, _LANE) for c in raw_out]   # lane-dense fused widths

    ws, bs = [], []
    for i, (w, b) in enumerate(zip(weights, biases)):
        _, din, dout = w.shape
        if i == 0:
            # obs is shared -> concatenate the K heads along the output dim
            wf = jnp.transpose(w, (1, 0, 2)).reshape(din, K * dout)
            rows, rows_pad = int(din), int(din)
        else:
            wf = _block_diag(w)
            rows, rows_pad = K * int(din), pad_out[i - 1]
        cols, cols_pad = raw_out[i], pad_out[i]
        wf = jnp.pad(wf, ((0, rows_pad - rows), (0, cols_pad - cols)))
        bf = jnp.pad(b.reshape(1, cols), ((0, 0), (0, cols_pad - cols)))
        ws.append(wf.astype(weight_dtype))
        bs.append(bf.astype(jnp.float32))     # biases stay f32 (tiny, VPU math)

    # Mean head: fold combine_function('mean') into the last matmul.
    a_pad = _round_up(A, _LANE)
    w_last, b_last = weights[-1], biases[-1]
    if L == 1:
        wm = jnp.mean(w_last, axis=0)                       # (obs_dim, A)
        rows, rows_pad = int(obs_dim), int(obs_dim)
    else:
        din = int(w_last.shape[1])
        wm = w_last.reshape(K * din, A) / K                 # vstack over k, /K
        rows, rows_pad = K * din, pad_out[-2]
    wm = jnp.pad(wm, ((0, rows_pad - rows), (0, a_pad - A)))
    bm = jnp.pad(jnp.mean(b_last, axis=0), ((0, 0), (0, a_pad - A)))

    return {
        "ws": tuple(ws), "bs": tuple(bs),
        "mean_w": wm.astype(weight_dtype), "mean_b": bm.astype(jnp.float32),
        "K": int(K), "A": A,
    }


# ----------------------------------------------------------------------------
# Jitted apply: pad batch -> pallas_call over batch tiles -> slice/reshape.
# ----------------------------------------------------------------------------
@partial(jax.jit, static_argnums=(3,))
def _multiq_apply(obs, ws, bs, meta):
    mode, K, A = meta
    B, obs_dim = obs.shape
    num_linear = len(ws)

    # Batch tiling: tiny batches -> one step with everything resident;
    # big batches -> TB=128 tiles, parallel across TensorCores, pipelined IO.
    B8 = _round_up(max(B, 1), _SUBLANE)
    TB = B8 if B8 <= _MAX_BATCH_TILE else _MAX_BATCH_TILE
    B_pad = _round_up(B, TB)
    obs_p = jnp.pad(obs, ((0, B_pad - B), (0, 0))) if B_pad != B else obs
    nb = B_pad // TB

    out_cols = int(ws[-1].shape[1])

    in_specs = [pl.BlockSpec((TB, obs_dim), lambda i: (i, 0))]
    flat_params = []
    for w, b in zip(ws, bs):
        # Whole-array VMEM residents: not pipelined, single-buffered.
        in_specs.append(pl.BlockSpec(memory_space=pltpu.MemorySpace.VMEM))
        in_specs.append(pl.BlockSpec(memory_space=pltpu.MemorySpace.VMEM))
        flat_params += [w, b]
    out_spec = pl.BlockSpec((TB, out_cols), lambda i: (i, 0))

    # VMEM budget: resident params + double-buffered obs/out tiles + a few
    # activation slabs + compiler-scratch headroom; capped at device capacity.
    param_bytes = sum(int(x.size) * x.dtype.itemsize for x in flat_params)
    widths = [int(obs_dim)] + [int(w.shape[1]) for w in ws]
    act_bytes = 3 * TB * max(widths) * 4
    io_bytes = 2 * (TB * int(obs_dim) * obs.dtype.itemsize + TB * out_cols * 4)
    vmem_needed = param_bytes + act_bytes + io_bytes + (2 << 20)
    try:
        vmem_cap = int(pltpu.get_tpu_info().vmem_capacity_bytes)
    except Exception:
        vmem_cap = 64 << 20  # conservative default (v7x physical VMEM per TC)
    vmem_limit = int(min(max(vmem_needed, 16 << 20), vmem_cap))

    out = pl.pallas_call(
        _make_multiq_kernel(num_linear),
        out_shape=jax.ShapeDtypeStruct((B_pad, out_cols), jnp.float32),
        grid_spec=pltpu.PrefetchScalarGridSpec(
            num_scalar_prefetch=0,
            grid=(nb,),
            in_specs=in_specs,
            out_specs=out_spec,
        ),
        compiler_params=pltpu.CompilerParams(
            dimension_semantics=("parallel",),
            vmem_limit_bytes=vmem_limit,
        ),
    )(obs_p, *flat_params)

    if mode == "stack":
        # lane-dense slab -> (B, K, A), matching torch.stack(outs, dim=1)
        res = out[:B, :K * A].reshape(B, K, A)
    else:  # "mean": combine_function('mean') already folded into the last matmul
        res = out[:B, :A]
    return res.astype(obs.dtype)


# ----------------------------------------------------------------------------
# Public wrappers
# ----------------------------------------------------------------------------
def multiq_forward(obs, fused):
    """obs: (B, obs_dim); fused = fuse_multiq_params(...). -> (B, K, A)."""
    return _multiq_apply(obs, fused["ws"], fused["bs"],
                         ("stack", fused["K"], fused["A"]))


def multiq_q_value(obs, fused):
    """combine_function('mean') fused into the kernel epilogue. -> (B, A)."""
    ws = fused["ws"][:-1] + (fused["mean_w"],)
    bs = fused["bs"][:-1] + (fused["mean_b"],)
    return _multiq_apply(obs, ws, bs, ("mean", fused["K"], fused["A"]))


# ----------------------------------------------------------------------------
# Deterministic parameter construction (mimics nn.Linear default init)
# ----------------------------------------------------------------------------
def init_multiq_params(key, obs_dim, action_dim, hidden_size, hidden_layers,
                       num_networks):
    dims = [obs_dim] + [hidden_size] * hidden_layers + [action_dim]
    weights, biases = [], []
    for i in range(len(dims) - 1):
        din, dout = dims[i], dims[i + 1]
        key, kw, kb = jax.random.split(key, 3)
        bound = 1.0 / jnp.sqrt(float(din))
        # stacked over the K networks; stored as (in, out) i.e. already transposed
        w = jax.random.uniform(kw, (num_networks, din, dout), jnp.float32,
                               minval=-bound, maxval=bound)
        b = jax.random.uniform(kb, (num_networks, 1, dout), jnp.float32,
                               minval=-bound, maxval=bound)
        weights.append(w)
        biases.append(b)
    return weights, biases


# ----------------------------------------------------------------------------
# Pure-JAX reference
# ----------------------------------------------------------------------------
def multiq_forward_ref(obs, weights, biases):
    outs = []
    K = weights[0].shape[0]
    for k in range(K):
        h = obs
        for i, (w, b) in enumerate(zip(weights, biases)):
            h = h @ w[k] + b[k]
            if i < len(weights) - 1:
                h = jnp.where(h >= 0, h, 0.01 * h)
        outs.append(h)
    return jnp.stack(outs, axis=1)


if __name__ == "__main__":
    B, OBS_DIM, ACTION_DIM = 4, 16, 6
    HIDDEN_SIZE, HIDDEN_LAYERS, NUM_NETWORKS = 32, 2, 10

    key = jax.random.PRNGKey(0)
    key, kobs = jax.random.split(key)
    obs = jax.random.normal(kobs, (B, OBS_DIM), jnp.float32)

    weights, biases = init_multiq_params(
        key, OBS_DIM, ACTION_DIM, HIDDEN_SIZE, HIDDEN_LAYERS, NUM_NETWORKS)
    ref = multiq_forward_ref(obs, weights, biases)

    # Fusion is hoisted: done ONCE, reused by every call below.
    fused = fuse_multiq_params(weights, biases)

    out = jax.block_until_ready(multiq_forward(obs, fused))
    assert out.shape == (B, NUM_NETWORKS, ACTION_DIM), out.shape
    assert jnp.allclose(out, ref, atol=1e-4, rtol=1e-4), "mismatch vs reference"

    # q_value: mean-over-K fused into the kernel (single launch, no (B,K,A) HBM slab)
    qv = jax.block_until_ready(multiq_q_value(obs, fused))
    assert qv.shape == (B, ACTION_DIM), qv.shape
    assert jnp.allclose(qv, jnp.mean(ref, axis=1), atol=1e-4, rtol=1e-4)

    # Larger batch exercises the parallel batch grid (TB=128, 2 tiles).
    B2 = 200
    key, kobs2 = jax.random.split(key)
    obs2 = jax.random.normal(kobs2, (B2, OBS_DIM), jnp.float32)
    ref2 = multiq_forward_ref(obs2, weights, biases)
    out2 = jax.block_until_ready(multiq_forward(obs2, fused))
    assert out2.shape == (B2, NUM_NETWORKS, ACTION_DIM)
    assert jnp.allclose(out2, ref2, atol=1e-4, rtol=1e-4)

    # bf16-stored weights (half the DMA/VMEM), f32 activations/accumulation.
    fused_bf16 = fuse_multiq_params(weights, biases, weight_dtype=jnp.bfloat16)
    out_bf16 = jax.block_until_ready(multiq_forward(obs, fused_bf16))
    assert jnp.allclose(out_bf16, ref, atol=1e-1, rtol=1e-1)

    print("KERNEL_OK")
</pallas_src>

<mosaic_0001>
module attributes {stable_mosaic.version = 11 : i64} {
  func.func @kernel(%arg0: i32, %arg1: memref<8x16xf32, #tpu.memory_space<vmem>>, %arg2: memref<16x384xf32, #tpu.memory_space<vmem>>, %arg3: memref<1x384xf32, #tpu.memory_space<vmem>>, %arg4: memref<384x384xf32, #tpu.memory_space<vmem>>, %arg5: memref<1x384xf32, #tpu.memory_space<vmem>>, %arg6: memref<384x128xf32, #tpu.memory_space<vmem>>, %arg7: memref<1x128xf32, #tpu.memory_space<vmem>>, %arg8: memref<8x128xf32, #tpu.memory_space<vmem>>) attributes {dimension_semantics = [#tpu.dimension_semantics<parallel>], iteration_bounds = array<i64: 1>, scalar_prefetch = 0 : i64, scratch_operands = 0 : i64, tpu.core_type = #tpu.core_type<tc>, window_params = [{transform_indices = @transform_0, window_bounds = array<i64: 8, 16>}, {pipeline_mode = #tpu.pipeline_mode<synchronous>, transform_indices = @transform_1, window_bounds = array<i64: 16, 384>}, {pipeline_mode = #tpu.pipeline_mode<synchronous>, transform_indices = @transform_2, window_bounds = array<i64: 1, 384>}, {pipeline_mode = #tpu.pipeline_mode<synchronous>, transform_indices = @transform_3, window_bounds = array<i64: 384, 384>}, {pipeline_mode = #tpu.pipeline_mode<synchronous>, transform_indices = @transform_4, window_bounds = array<i64: 1, 384>}, {pipeline_mode = #tpu.pipeline_mode<synchronous>, transform_indices = @transform_5, window_bounds = array<i64: 384, 128>}, {pipeline_mode = #tpu.pipeline_mode<synchronous>, transform_indices = @transform_6, window_bounds = array<i64: 1, 128>}, {transform_indices = @transform_7, window_bounds = array<i64: 8, 128>}]} {
    %c0 = arith.constant 0 : index
    %c0_0 = arith.constant 0 : index
    %0 = vector.load %arg1[%c0, %c0_0] : memref<8x16xf32, #tpu.memory_space<vmem>>, vector<8x16xf32>
    %c0_1 = arith.constant 0 : index
    %c0_2 = arith.constant 0 : index
    %1 = vector.load %arg2[%c0_1, %c0_2] : memref<16x384xf32, #tpu.memory_space<vmem>>, vector<16x384xf32>
    %c0_3 = arith.constant 0 : index
    %c0_4 = arith.constant 0 : index
    %2 = vector.load %arg3[%c0_3, %c0_4] : memref<1x384xf32, #tpu.memory_space<vmem>>, vector<1x384xf32>
    %cst = arith.constant dense<0.000000e+00> : vector<8x384xf32>
    %3 = tpu.matmul %0, %1, %cst {dimension_numbers = #tpu.dot_dimension_numbers<[1], [0], [0], [1], [0, 0, 1, 1], [], []>} : vector<8x16xf32>, vector<16x384xf32>, vector<8x384xf32> -> vector<8x384xf32>
    %4 = vector.broadcast %2 : vector<1x384xf32> to vector<8x384xf32>
    %5 = arith.addf %3, %4 : vector<8x384xf32>
    %cst_5 = arith.constant 0.000000e+00 : f32
    %6 = vector.broadcast %cst_5 : f32 to vector<8x384xf32>
    %7 = arith.cmpf oge, %5, %6 : vector<8x384xf32>
    %cst_6 = arith.constant 0.00999999977 : f32
    %8 = vector.broadcast %cst_6 : f32 to vector<8x384xf32>
    %9 = arith.mulf %8, %5 : vector<8x384xf32>
    %10 = arith.select %7, %5, %9 : vector<8x384xi1>, vector<8x384xf32>
    %c0_7 = arith.constant 0 : index
    %c0_8 = arith.constant 0 : index
    %11 = vector.load %arg4[%c0_7, %c0_8] : memref<384x384xf32, #tpu.memory_space<vmem>>, vector<384x384xf32>
    %c0_9 = arith.constant 0 : index
    %c0_10 = arith.constant 0 : index
    %12 = vector.load %arg5[%c0_9, %c0_10] : memref<1x384xf32, #tpu.memory_space<vmem>>, vector<1x384xf32>
    %cst_11 = arith.constant dense<0.000000e+00> : vector<8x384xf32>
    %13 = tpu.matmul %10, %11, %cst_11 {dimension_numbers = #tpu.dot_dimension_numbers<[1], [0], [0], [1], [0, 0, 1, 1], [], []>} : vector<8x384xf32>, vector<384x384xf32>, vector<8x384xf32> -> vector<8x384xf32>
    %14 = vector.broadcast %12 : vector<1x384xf32> to vector<8x384xf32>
    %15 = arith.addf %13, %14 : vector<8x384xf32>
    %cst_12 = arith.constant 0.000000e+00 : f32
    %16 = vector.broadcast %cst_12 : f32 to vector<8x384xf32>
    %17 = arith.cmpf oge, %15, %16 : vector<8x384xf32>
    %cst_13 = arith.constant 0.00999999977 : f32
    %18 = vector.broadcast %cst_13 : f32 to vector<8x384xf32>
    %19 = arith.mulf %18, %15 : vector<8x384xf32>
    %20 = arith.select %17, %15, %19 : vector<8x384xi1>, vector<8x384xf32>
    %c0_14 = arith.constant 0 : index
    %c0_15 = arith.constant 0 : index
    %21 = vector.load %arg6[%c0_14, %c0_15] : memref<384x128xf32, #tpu.memory_space<vmem>>, vector<384x128xf32>
    %c0_16 = arith.constant 0 : index
    %c0_17 = arith.constant 0 : index
    %22 = vector.load %arg7[%c0_16, %c0_17] : memref<1x128xf32, #tpu.memory_space<vmem>>, vector<1x128xf32>
    %cst_18 = arith.constant dense<0.000000e+00> : vector<8x128xf32>
    %23 = tpu.matmul %20, %21, %cst_18 {dimension_numbers = #tpu.dot_dimension_numbers<[1], [0], [0], [1], [0, 0, 1, 1], [], []>} : vector<8x384xf32>, vector<384x128xf32>, vector<8x128xf32> -> vector<8x128xf32>
    %24 = vector.broadcast %22 : vector<1x128xf32> to vector<8x128xf32>
    %25 = arith.addf %23, %24 : vector<8x128xf32>
    %c0_19 = arith.constant 0 : index
    %c0_20 = arith.constant 0 : index
    %26 = vector.load %arg8[%c0_19, %c0_20] : memref<8x128xf32, #tpu.memory_space<vmem>>, vector<8x128xf32>
    tpu.vector_store %arg8[%c0_19, %c0_20], %25 {strides = array<i32>} : memref<8x128xf32, #tpu.memory_space<vmem>>, vector<8x128xf32>,
    return
  }
  func.func @transform_0(%arg0: i32) -> (i32, i32) {
    %c0_i32 = arith.constant 0 : i32
    %c0_i32_0 = arith.constant 0 : i32
    return %arg0, %c0_i32 : i32, i32
  }
  func.func @transform_1(%arg0: i32) -> (i32, i32) {
    %c0_i32 = arith.constant 0 : i32
    %c0_i32_0 = arith.constant 0 : i32
    %c0_i32_1 = arith.constant 0 : i32
    return %c0_i32, %c0_i32_0 : i32, i32
  }
  func.func @transform_2(%arg0: i32) -> (i32, i32) {
    %c0_i32 = arith.constant 0 : i32
    %c0_i32_0 = arith.constant 0 : i32
    %c0_i32_1 = arith.constant 0 : i32
    return %c0_i32, %c0_i32_0 : i32, i32
  }
  func.func @transform_3(%arg0: i32) -> (i32, i32) {
    %c0_i32 = arith.constant 0 : i32
    %c0_i32_0 = arith.constant 0 : i32
    %c0_i32_1 = arith.constant 0 : i32
    return %c0_i32, %c0_i32_0 : i32, i32
  }
  func.func @transform_4(%arg0: i32) -> (i32, i32) {
    %c0_i32 = arith.constant 0 : i32
    %c0_i32_0 = arith.constant 0 : i32
    %c0_i32_1 = arith.constant 0 : i32
    return %c0_i32, %c0_i32_0 : i32, i32
  }
  func.func @transform_5(%arg0: i32) -> (i32, i32) {
    %c0_i32 = arith.constant 0 : i32
    %c0_i32_0 = arith.constant 0 : i32
    %c0_i32_1 = arith.constant 0 : i32
    return %c0_i32, %c0_i32_0 : i32, i32
  }
  func.func @transform_6(%arg0: i32) -> (i32, i32) {
    %c0_i32 = arith.constant 0 : i32
    %c0_i32_0 = arith.constant 0 : i32
    %c0_i32_1 = arith.constant 0 : i32
    return %c0_i32, %c0_i32_0 : i32, i32
  }
  func.func @transform_7(%arg0: i32) -> (i32, i32) {
    %c0_i32 = arith.constant 0 : i32
    %c0_i32_0 = arith.constant 0 : i32
    return %arg0, %c0_i32 : i32, i32
  }
}

</mosaic_0001>

<bundles_post_ra>
// kernel: _multiq_apply.1
= control target key start
LH: loop header
LB: loop body
LE: loop exit
PB: predicated region body
PF: predicated region fallthrough
CT: control target
= control target key end

     0   :  { %12 = vsyncpa [#allocation3], 0  ;;  %s1301_s0 = inlined_call_operand.vmem [shape: f32[8,16], index: 0, kind: input, shape index: {}]   ;;  %s1302_s1 = inlined_call_operand.hbm [shape: f32[16,384], index: 1, kind: input, shape index: {}]   ;;  %s1303_s2 = inlined_call_operand.vmem [shape: f32[1,384], index: 2, kind: input, shape index: {}]   ;;  %s1304_s3 = inlined_call_operand.hbm [shape: f32[384,384], index: 3, kind: input, shape index: {}]   ;;  %s1305_s4 = inlined_call_operand.vmem [shape: f32[1,384], index: 4, kind: input, shape index: {}]   ;;  %s1306_s5 = inlined_call_operand.hbm [shape: f32[384,128], index: 5, kind: input, shape index: {}]   ;;  %s1307_s6 = inlined_call_operand.vmem [shape: f32[1,128], index: 6, kind: input, shape index: {}]   ;;  %s1308_s7 = inlined_call_operand.vmem [shape: f32[8,128], index: 7, kind: output, shape index: {}]  }
   0x1   :  { %13 = vsyncpa [#allocation5], 0  ;;  %s1159_s24 = smov [#allocation4]   ;;  %s1160_s26 = smov [#allocation2]  }
   0x2   :  { %s35_s25 = sshll.u32 %s1159_s24, 4  ;;  %s21_s27 = sshll.u32 %s1160_s26, 4  ;;  %s36_s25 = int_to_ptr.vmem [resolvable:$true] %s35_s25  ;;  %s22_s27 = int_to_ptr.vmem [resolvable:$true] %s21_s27 }
   0x3   :  { %s1103_s28 = scalar_lea.vmem %s36_s25, 18432  ;;  %p1108_p1 = scmp.lt.s32.totalorder %s36_s25, %s36_s25 }
   0x4   :  { %p1104_p0 = scmp.ne.s32.totalorder %s36_s25, %s1103_s28  ;;  %p1109_p2 = scmp.lt.s32.totalorder %s1103_s28, %s1103_s28 }
   0x6   :  { %p1110_p3 = por %p1109_p2, %p1108_p1 }
   0x8   :  { %p1111_p4 = pnand %p1110_p3, %p1104_p0 }
   0xa   :  { %1114 = shalt.err (!%p1111_p4)
}
   0xb   :  { %s1161_s29 = smov 384   ;;  %s1162_s30 = smov 24  }
   0xc   :  { %41 = dma.hbm_to_vmem [thread:$0]  %s1304_s3, 18432, %s36_s25, [#allocation5], %s1161_s29, %s1161_s29, %s1162_s30  }
   0xd   :  { %s1123_s10 = scalar_lea.vmem %s22_s27, 768  ;;  %p1128_p6 = scmp.lt.s32.totalorder %s22_s27, %s22_s27 }
   0xe   :  { %p1124_p5 = scmp.ne.s32.totalorder %s22_s27, %s1123_s10  ;;  %p1129_p7 = scmp.lt.s32.totalorder %s1123_s10, %s1123_s10 }
  0x10   :  { %p1130_p8 = por %p1129_p7, %p1128_p6 }
  0x12   :  { %p1131_p9 = pnand %p1130_p8, %p1124_p5 }
  0x14   :  { %1134 = shalt.err (!%p1131_p9)
}
  0x15   :  { %27 = dma.hbm_to_vmem [thread:$0]  %s1302_s1, 768, %s22_s27, [#allocation3], %s1161_s29, %s1161_s29, %s1162_s30  }
  0x16   :  { %s1163_s13 = smov [#allocation6]  }
  0x17   :  { %s49_s14 = sshll.u32 %s1163_s13, 4  ;;  %s50_s14 = int_to_ptr.vmem [resolvable:$true] %s49_s14 }
  0x18   :  { %s1143_s15 = scalar_lea.vmem %s50_s14, 6144  ;;  %p1148_p11 = scmp.lt.s32.totalorder %s50_s14, %s50_s14 }
  0x19   :  { %p1144_p10 = scmp.ne.s32.totalorder %s50_s14, %s1143_s15  ;;  %p1149_p12 = scmp.lt.s32.totalorder %s1143_s15, %s1143_s15 }
  0x1b   :  { %p1150_p13 = por %p1149_p12, %p1148_p11 }
  0x1d   :  { %p1151_p0 = pnand %p1150_p13, %p1144_p10 }
  0x1f   :  { %1154 = shalt.err (!%p1151_p0)
}
  0x20   :  { %s1164_s3 = smov 128   ;;  %s1165_s16 = smov 8  }
  0x21   :  { %55 = dma.hbm_to_vmem [thread:$0]  %s1306_s5, 6144, %s50_s14, [#allocation5], %s1164_s3, %s1164_s3, %s1165_s16  }
  0x22   :  { %1155 = dma.done.wait [#allocation3], 768  }
  0x23   :  { %1156 = vsyncadd [#allocation3], 4294966528 }
  0x24   :  { %1157 = dma.done.wait [#allocation5], 24576  }
  0x25   :  { %1158 = vsyncadd [#allocation5], 4294942720  ;;  %v1166_v0 = vmov 0.0   ;;  %v72_v1 = vld [vmem:[#allocation2 + $0x20] sm:$0xff]  ;;  %v71_v2 = vld [vmem:[#allocation2 + $0x18] sm:$0xff]  ;;  %vm91_vm0 = vcmask 130048  }
  0x26   :  { %159 = vmatprep.mubr.f32.mxu1 %v1166_v0  ;;  %v69_v3 = vld [vmem:[#allocation2 + $0x8] sm:$0xff]  ;;  %123 = vmatprep.subr.mxu1 %v72_v1  ;;  %v68_v4 = vld [vmem:[#allocation2] sm:$0xff]  ;;  %v290_v7 = vld [vmem:[#allocation4 + $0x168] sm:$0xff]  ;;  %vm1167_vm1 = vmmov 0  }
  0x27   :  { %124 = vmatpush1.msra.mxu1 %v71_v2  ;;  %v67_v5 = vld [vmem:[%s1301_s0] sm:$0xff]  ;;  %v73_v8 = vld [vmem:[#allocation2 + $0x28] sm:$0xff]  ;;  %v70_v10 = vld [vmem:[#allocation2 + $0x10] sm:$0xff] }
  0x28   :  { %v291_v6 = vld [vmem:[#allocation4 + $0x170] sm:$0xff]  ;;  %125 = vmatprep.subr.mxu1 %v69_v3  ;;  %v288_v9 = vld [vmem:[#allocation4 + $0x158] sm:$0xff]  ;;  %v285_v12 = vld [vmem:[#allocation4 + $0x140] sm:$0xff] }
  0x29   :  { %406 = vmatprep.subr.mxu0 %v291_v6  ;;  %126 = vmatpush1.msra.mxu1 %v68_v4  ;;  %v287_v11 = vld [vmem:[#allocation4 + $0x150] sm:$0xff]  ;;  %v284_v13 = vld [vmem:[#allocation4 + $0x138] sm:$0xff]  ;;  %v282_v14 = vld [vmem:[#allocation4 + $0x128] sm:$0xff] }
  0x2a   :  { %407 = vmatpush1.msra.mxu0 %v290_v7  ;;  %899 = vmatmul.mubr.msk.f32.vlgmr.msra.gmra.mxu1 %vm91_vm0, %v67_v5  ;;  %v281_v15 = vld [vmem:[#allocation4 + $0x120] sm:$0xff]  ;;  %v279_v16 = vld [vmem:[#allocation4 + $0x110] sm:$0xff]  ;;  %v278_v17 = vld [vmem:[#allocation4 + $0x108] sm:$0xff] }
  0x2b   :  { %1009 = vmatprep.subr.mxu1 %v1166_v0  ;;  %1013 = vmatprep.mubr.msk.f32.mxu1 %vm1167_vm1, %v1166_v0  ;;  %v276_v18 = vld [vmem:[#allocation4 + $0xf8] sm:$0xff]  ;;  %v275_v19 = vld [vmem:[#allocation4 + $0xf0] sm:$0xff]  ;;  %v273_v21 = vld [vmem:[#allocation4 + $0xe0] sm:$0xff] }
  0x2c   :  { %1010 = vmatpush3.msra.mxu1 %v73_v8  ;;  %408 = vmatprep.subr.mxu0 %v288_v9  ;;  %v387_v20 = vld [vmem:[#allocation4 + $0x470] sm:$0xff]  ;;  %v386_v22 = vld [vmem:[#allocation4 + $0x468] sm:$0xff]  ;;  %v272_v23 = vld [vmem:[#allocation4 + $0xd8] sm:$0xff] }
  0x2d   :  { %1011 = vmatprep.subr.mxu1 %v1166_v0  ;;  %409 = vmatpush1.msra.mxu0 %v287_v11  ;;  %v384_v24 = vld [vmem:[#allocation4 + $0x458] sm:$0xff]  ;;  %v383_v25 = vld [vmem:[#allocation4 + $0x450] sm:$0xff]  ;;  %v270_v26 = vld [vmem:[#allocation4 + $0xc8] sm:$0xff] }
  0x2e   :  { %1012 = vmatpush3.msra.mxu1 %v70_v10  ;;  %410 = vmatprep.subr.mxu0 %v285_v12  ;;  %v381_v27 = vld [vmem:[#allocation4 + $0x440] sm:$0xff]  ;;  %v380_v29 = vld [vmem:[#allocation4 + $0x438] sm:$0xff]  ;;  %v378_v30 = vld [vmem:[#allocation4 + $0x428] sm:$0xff] }
  0x2f   :  { %1014 = vmatmul.mubr.msk.f32.vlgmr.msra.gmra.mxu1 %vm91_vm0, %v67_v5  ;;  %411 = vmatpush1.msra.mxu0 %v284_v13  ;;  %v269_v28 = vld [vmem:[#allocation4 + $0xc0] sm:$0xff]  ;;  %v267_v31 = vld [vmem:[#allocation4 + $0xb0] sm:$0xff]  ;;  %v266_v33 = vld [vmem:[#allocation4 + $0xa8] sm:$0xff] }
  0x30   :  { %541 = vmatprep.mubr.f32.mxu1 %v1166_v0  ;;  %412 = vmatprep.subr.mxu0 %v282_v14  ;;  %v377_v32 = vld [vmem:[#allocation4 + $0x420] sm:$0xff]  ;;  %v375_v34 = vld [vmem:[#allocation4 + $0x410] sm:$0xff]  ;;  %v264_v35 = vld [vmem:[#allocation4 + $0x98] sm:$0xff] }
  0x31   :  { %413 = vmatpush1.msra.mxu0 %v281_v15  ;;  %477 = vmatprep.subr.mxu1 %v387_v20  ;;  %v374_v36 = vld [vmem:[#allocation4 + $0x408] sm:$0xff]  ;;  %v263_v37 = vld [vmem:[#allocation4 + $0x90] sm:$0xff]  ;;  %v372_v38 = vld [vmem:[#allocation4 + $0x3f8] sm:$0xff] }
  0x32   :  { %414 = vmatprep.subr.mxu0 %v279_v16  ;;  %478 = vmatpush1.msra.mxu1 %v386_v22  ;;  %v261_v39 = vld [vmem:[#allocation4 + $0x80] sm:$0xff]  ;;  %v371_v40 = vld [vmem:[#allocation4 + $0x3f0] sm:$0xff]  ;;  %v260_v41 = vld [vmem:[#allocation4 + $0x78] sm:$0xff] }
  0x33   :  { %415 = vmatpush1.msra.mxu0 %v278_v17  ;;  %479 = vmatprep.subr.mxu1 %v384_v24  ;;  %v369_v42 = vld [vmem:[#allocation4 + $0x3e0] sm:$0xff]  ;;  %v258_v43 = vld [vmem:[#allocation4 + $0x68] sm:$0xff]  ;;  %v368_v44 = vld [vmem:[#allocation4 + $0x3d8] sm:$0xff] }
  0x34   :  { %416 = vmatprep.subr.mxu0 %v276_v18  ;;  %480 = vmatpush1.msra.mxu1 %v383_v25  ;;  %v257_v45 = vld [vmem:[#allocation4 + $0x60] sm:$0xff]  ;;  %v366_v46 = vld [vmem:[#allocation4 + $0x3c8] sm:$0xff]  ;;  %v255_v47 = vld [vmem:[#allocation4 + $0x50] sm:$0xff] }
  0x35   :  { %417 = vmatpush1.msra.mxu0 %v275_v19  ;;  %481 = vmatprep.subr.mxu1 %v381_v27  ;;  %v365_v48 = vld [vmem:[#allocation4 + $0x3c0] sm:$0xff]  ;;  %v254_v49 = vld [vmem:[#allocation4 + $0x48] sm:$0xff]  ;;  %v363_v50 = vld [vmem:[#allocation4 + $0x3b0] sm:$0xff] }
  0x36   :  { %418 = vmatprep.subr.mxu0 %v273_v21  ;;  %482 = vmatpush1.msra.mxu1 %v380_v29  ;;  %v252_v51 = vld [vmem:[#allocation4 + $0x38] sm:$0xff]  ;;  %v362_v52 = vld [vmem:[#allocation4 + $0x3a8] sm:$0xff]  ;;  %v251_v53 = vld [vmem:[#allocation4 + $0x30] sm:$0xff] }
  0x37   :  { %419 = vmatpush1.msra.mxu0 %v272_v23  ;;  %483 = vmatprep.subr.mxu1 %v378_v30  ;;  %v360_v54 = vld [vmem:[#allocation4 + $0x398] sm:$0xff]  ;;  %v249_v55 = vld [vmem:[#allocation4 + $0x20] sm:$0xff]  ;;  %v359_v56 = vld [vmem:[#allocation4 + $0x390] sm:$0xff] }
  0x38   :  { %420 = vmatprep.subr.mxu0 %v270_v26  ;;  %484 = vmatpush1.msra.mxu1 %v377_v32  ;;  %v248_v57 = vld [vmem:[#allocation4 + $0x18] sm:$0xff]  ;;  %v357_v58 = vld [vmem:[#allocation4 + $0x380] sm:$0xff]  ;;  %v246_v59 = vld [vmem:[#allocation4 + $0x8] sm:$0xff] }
  0x39   :  { %421 = vmatpush1.msra.mxu0 %v269_v28  ;;  %485 = vmatprep.subr.mxu1 %v375_v34  ;;  %v356_v60 = vld [vmem:[#allocation4 + $0x378] sm:$0xff]  ;;  %v245_v61 = vld [vmem:[#allocation4] sm:$0xff]  ;;  %v354_v62 = vld [vmem:[#allocation4 + $0x368] sm:$0xff] }
  0x3a   :  { %422 = vmatprep.subr.mxu0 %v267_v31  ;;  %486 = vmatpush1.msra.mxu1 %v374_v36  ;;  %v339_v63 = vld [vmem:[#allocation4 + $0x2f0] sm:$0xff]  ;;  %v338_v1 = vld [vmem:[#allocation4 + $0x2e8] sm:$0xff]  ;;  %v336_v2 = vld [vmem:[#allocation4 + $0x2d8] sm:$0xff] }
  0x3b   :  { %423 = vmatpush1.msra.mxu0 %v266_v33  ;;  %487 = vmatprep.subr.mxu1 %v372_v38  ;;  %v335_v3 = vld [vmem:[#allocation4 + $0x2d0] sm:$0xff]  ;;  %v333_v4 = vld [vmem:[#allocation4 + $0x2c0] sm:$0xff]  ;;  %v332_v5 = vld [vmem:[#allocation4 + $0x2b8] sm:$0xff] }
  0x3c   :  { %424 = vmatprep.subr.mxu0 %v264_v35  ;;  %488 = vmatpush1.msra.mxu1 %v371_v40  ;;  %v330_v6 = vld [vmem:[#allocation4 + $0x2a8] sm:$0xff]  ;;  %v329_v7 = vld [vmem:[#allocation4 + $0x2a0] sm:$0xff]  ;;  %v327_v8 = vld [vmem:[#allocation4 + $0x290] sm:$0xff] }
  0x3d   :  { %425 = vmatpush1.msra.mxu0 %v263_v37  ;;  %489 = vmatprep.subr.mxu1 %v369_v42  ;;  %v326_v9 = vld [vmem:[#allocation4 + $0x288] sm:$0xff]  ;;  %v324_v10 = vld [vmem:[#allocation4 + $0x278] sm:$0xff]  ;;  %v323_v11 = vld [vmem:[#allocation4 + $0x270] sm:$0xff]  ;;  %v76_v42 = vlaneseq }
  0x3e   :  { %426 = vmatprep.subr.mxu0 %v261_v39  ;;  %490 = vmatpush1.msra.mxu1 %v368_v44  ;;  %v321_v12 = vld [vmem:[#allocation4 + $0x260] sm:$0xff]  ;;  %v320_v13 = vld [vmem:[#allocation4 + $0x258] sm:$0xff]  ;;  %v318_v14 = vld [vmem:[#allocation4 + $0x248] sm:$0xff] }
  0x3f   :  { %427 = vmatpush1.msra.mxu0 %v260_v41  ;;  %491 = vmatprep.subr.mxu1 %v366_v46  ;;  %v317_v15 = vld [vmem:[#allocation4 + $0x240] sm:$0xff]  ;;  %v315_v16 = vld [vmem:[#allocation4 + $0x230] sm:$0xff]  ;;  %v314_v17 = vld [vmem:[#allocation4 + $0x228] sm:$0xff] }
  0x40   :  { %428 = vmatprep.subr.mxu0 %v258_v43  ;;  %492 = vmatpush1.msra.mxu1 %v365_v48  ;;  %v312_v18 = vld [vmem:[#allocation4 + $0x218] sm:$0xff]  ;;  %v311_v19 = vld [vmem:[#allocation4 + $0x210] sm:$0xff]  ;;  %v309_v20 = vld [vmem:[#allocation4 + $0x200] sm:$0xff]  ;;  %v1229_v43 = vshrl.u32 %v76_v42, 7 }
  0x41   :  { %429 = vmatpush1.msra.mxu0 %v257_v45  ;;  %493 = vmatprep.subr.mxu1 %v363_v50  ;;  %v308_v21 = vld [vmem:[#allocation4 + $0x1f8] sm:$0xff]  ;;  %v306_v22 = vld [vmem:[#allocation4 + $0x1e8] sm:$0xff]  ;;  %v305_v23 = vld [vmem:[#allocation4 + $0x1e0] sm:$0xff] }
  0x42   :  { %430 = vmatprep.subr.mxu0 %v255_v47  ;;  %494 = vmatpush1.msra.mxu1 %v362_v52  ;;  %v303_v24 = vld [vmem:[#allocation4 + $0x1d0] sm:$0xff]  ;;  %v353_v25 = vld [vmem:[#allocation4 + $0x360] sm:$0xff]  ;;  %v302_v26 = vld [vmem:[#allocation4 + $0x1c8] sm:$0xff]  ;;  %v78_v44 = vsub.s32 0, %v1229_v43  ;;  %v82_v46 = vsub.s32 1, %v1229_v43  ;;  %v86_v48 = vsub.s32 2, %v1229_v43 }
  0x43   :  { %431 = vmatpush1.msra.mxu0 %v254_v49  ;;  %495 = vmatprep.subr.mxu1 %v360_v54  ;;  %v351_v27 = vld [vmem:[#allocation4 + $0x350] sm:$0xff]  ;;  %v300_v28 = vld [vmem:[#allocation4 + $0x1b8] sm:$0xff]  ;;  %v350_v29 = vld [vmem:[#allocation4 + $0x348] sm:$0xff] }
  0x44   :  { %432 = vmatprep.subr.mxu0 %v252_v51  ;;  %496 = vmatpush1.msra.mxu1 %v359_v56  ;;  %v299_v30 = vld [vmem:[#allocation4 + $0x1b0] sm:$0xff]  ;;  %v348_v31 = vld [vmem:[#allocation4 + $0x338] sm:$0xff]  ;;  %v297_v32 = vld [vmem:[#allocation4 + $0x1a0] sm:$0xff] }
  0x45   :  { %433 = vmatpush1.msra.mxu0 %v251_v53  ;;  %497 = vmatprep.subr.mxu1 %v357_v58  ;;  %v347_v33 = vld [vmem:[#allocation4 + $0x330] sm:$0xff]  ;;  %v296_v34 = vld [vmem:[#allocation4 + $0x198] sm:$0xff]  ;;  %v345_v35 = vld [vmem:[#allocation4 + $0x320] sm:$0xff] }
  0x46   :  { %434 = vmatprep.subr.mxu0 %v249_v55  ;;  %498 = vmatpush1.msra.mxu1 %v356_v60  ;;  %v294_v36 = vld [vmem:[#allocation4 + $0x188] sm:$0xff]  ;;  %v344_v37 = vld [vmem:[#allocation4 + $0x318] sm:$0xff]  ;;  %v293_v38 = vld [vmem:[#allocation4 + $0x180] sm:$0xff] }
  0x47   :  { %435 = vmatpush1.msra.mxu0 %v248_v57  ;;  %499 = vmatprep.subr.mxu1 %v354_v62  ;;  %v342_v39 = vld [vmem:[#allocation4 + $0x308] sm:$0xff]  ;;  %v341_v40 = vld [vmem:[#allocation4 + $0x300] sm:$0xff]  ;;  %v340_v41 = vld [vmem:[#allocation4 + $0x2f8] sm:$0xff] }
  0x48   :  { %436 = vmatprep.subr.mxu0 %v246_v59  ;;  %500 = vmatpush1.msra.mxu1 %v353_v25  ;;  %v74_v45 = vld [vmem:[%s1303_s2] sm:$0x7]  ;;  %v388_v62 = vld [vmem:[#allocation4 + $0x478] sm:$0xff]  ;;  %v298_v42 = vld [vmem:[#allocation4 + $0x1a8] sm:$0xff] }
  0x49   :  { %437 = vmatpush1.msra.mxu0 %v245_v61  ;;  %501 = vmatprep.subr.mxu1 %v351_v27  ;;  %v79_v47 = vrot.slane %v74_v45, %v78_v44  ;;  %v83_v49 = vrot.slane %v74_v45, %v82_v46  ;;  %v87_v52 = vrot.slane %v74_v45, %v86_v48  ;;  %v364_v25 = vld [vmem:[#allocation4 + $0x3b8] sm:$0xff]  ;;  %v313_v27 = vld [vmem:[#allocation4 + $0x220] sm:$0xff]  ;;  %v346_v45 = vld [vmem:[#allocation4 + $0x328] sm:$0xff] }
  0x4a   :  { %438 = vmatprep.subr.mxu0 %v339_v63  ;;  %502 = vmatpush1.msra.mxu1 %v350_v29  ;;  %v265_v29 = vld [vmem:[#allocation4 + $0xa0] sm:$0xff] }
  0x4b   :  { %439 = vmatpush2.msra.mxu0 %v338_v1  ;;  %503 = vmatprep.subr.mxu1 %v348_v31  ;;  %v292_v1 = vld [vmem:[#allocation4 + $0x178] sm:$0xff]  ;;  %v358_v31 = vld [vmem:[#allocation4 + $0x388] sm:$0xff] }
  0x4c   :  { %440 = vmatprep.subr.mxu0 %v336_v2  ;;  %504 = vmatpush1.msra.mxu1 %v347_v33  ;;  %v307_v33 = vld [vmem:[#allocation4 + $0x1f0] sm:$0xff] }
  0x4d   :  { %441 = vmatpush2.msra.mxu0 %v335_v3  ;;  %505 = vmatprep.subr.mxu1 %v345_v35  ;;  %v337_v3 = vld [vmem:[#allocation4 + $0x2e0] sm:$0xff]  ;;  %v259_v35 = vld [vmem:[#allocation4 + $0x70] sm:$0xff] }
  0x4e   :  { %442 = vmatprep.subr.mxu0 %v333_v4  ;;  %506 = vmatpush1.msra.mxu1 %v344_v37  ;;  %v385_v4 = vld [vmem:[#allocation4 + $0x460] sm:$0xff]  ;;  %v352_v37 = vld [vmem:[#allocation4 + $0x358] sm:$0xff] }
  0x4f   :  { %443 = vmatpush2.msra.mxu0 %v332_v5  ;;  %507 = vmatprep.subr.mxu1 %v342_v39  ;;  %v289_v5 = vld [vmem:[#allocation4 + $0x160] sm:$0xff] }
  0x50   :  { %444 = vmatprep.subr.mxu0 %v330_v6  ;;  %508 = vmatpush1.msra.mxu1 %v341_v40  ;;  %v334_v6 = vld [vmem:[#allocation4 + $0x2c8] sm:$0xff]  ;;  %v301_v39 = vld [vmem:[#allocation4 + $0x1c0] sm:$0xff] }
  0x51   :  { %445 = vmatpush2.msra.mxu0 %v329_v7  ;;  %905 = vmatprep.subr.mxu1 %v340_v41  ;;  %v382_v7 = vld [vmem:[#allocation4 + $0x448] sm:$0xff]  ;;  %v349_v40 = vld [vmem:[#allocation4 + $0x340] sm:$0xff] }
  0x52   :  { %446 = vmatprep.subr.mxu0 %v327_v8  ;;  %v286_v8 = vld [vmem:[#allocation4 + $0x148] sm:$0xff]  ;;  %v253_v41 = vld [vmem:[#allocation4 + $0x40] sm:$0xff] }
  0x53   :  { %447 = vmatpush2.msra.mxu0 %v326_v9  ;;  %v331_v9 = vld [vmem:[#allocation4 + $0x2b0] sm:$0xff] }
  0x54   :  { %448 = vmatprep.subr.mxu0 %v324_v10  ;;  %v379_v10 = vld [vmem:[#allocation4 + $0x430] sm:$0xff] }
  0x55   :  { %449 = vmatpush2.msra.mxu0 %v323_v11  ;;  %v283_v11 = vld [vmem:[#allocation4 + $0x130] sm:$0xff] }
  0x56   :  { %450 = vmatprep.subr.mxu0 %v321_v12  ;;  %v328_v12 = vld [vmem:[#allocation4 + $0x298] sm:$0xff] }
  0x57   :  { %451 = vmatpush2.msra.mxu0 %v320_v13  ;;  %v376_v13 = vld [vmem:[#allocation4 + $0x418] sm:$0xff] }
  0x58   :  { %452 = vmatprep.subr.mxu0 %v318_v14  ;;  %v280_v14 = vld [vmem:[#allocation4 + $0x118] sm:$0xff] }
  0x59   :  { %453 = vmatpush2.msra.mxu0 %v317_v15  ;;  %v325_v15 = vld [vmem:[#allocation4 + $0x280] sm:$0xff] }
  0x5a   :  { %454 = vmatprep.subr.mxu0 %v315_v16  ;;  %v373_v16 = vld [vmem:[#allocation4 + $0x400] sm:$0xff] }
  0x5b   :  { %455 = vmatpush2.msra.mxu0 %v314_v17  ;;  %v277_v17 = vld [vmem:[#allocation4 + $0x100] sm:$0xff] }
  0x5c   :  { %456 = vmatprep.subr.mxu0 %v312_v18  ;;  %v322_v18 = vld [vmem:[#allocation4 + $0x268] sm:$0xff] }
  0x5d   :  { %457 = vmatpush2.msra.mxu0 %v311_v19  ;;  %v370_v19 = vld [vmem:[#allocation4 + $0x3e8] sm:$0xff] }
  0x5e   :  { %458 = vmatprep.subr.mxu0 %v309_v20  ;;  %v274_v20 = vld [vmem:[#allocation4 + $0xe8] sm:$0xff] }
  0x5f   :  { %459 = vmatpush2.msra.mxu0 %v308_v21  ;;  %v319_v21 = vld [vmem:[#allocation4 + $0x250] sm:$0xff] }
  0x60   :  { %460 = vmatprep.subr.mxu0 %v306_v22  ;;  %v367_v22 = vld [vmem:[#allocation4 + $0x3d0] sm:$0xff] }
  0x61   :  { %461 = vmatpush2.msra.mxu0 %v305_v23  ;;  %v271_v23 = vld [vmem:[#allocation4 + $0xd0] sm:$0xff] }
  0x62   :  { %462 = vmatprep.subr.mxu0 %v303_v24  ;;  %v316_v24 = vld [vmem:[#allocation4 + $0x238] sm:$0xff] }
  0x63   :  { %463 = vmatpush2.msra.mxu0 %v302_v26  ;;  %v268_v26 = vld [vmem:[#allocation4 + $0xb8] sm:$0xff] }
  0x64   :  { %464 = vmatprep.subr.mxu0 %v300_v28  ;;  %v361_v28 = vld [vmem:[#allocation4 + $0x3a0] sm:$0xff] }
  0x65   :  { %465 = vmatpush2.msra.mxu0 %v299_v30  ;;  %v310_v30 = vld [vmem:[#allocation4 + $0x208] sm:$0xff] }
  0x66   :  { %466 = vmatprep.subr.mxu0 %v297_v32  ;;  %v262_v32 = vld [vmem:[#allocation4 + $0x88] sm:$0xff] }
  0x67   :  { %467 = vmatpush2.msra.mxu0 %v296_v34  ;;  %v355_v34 = vld [vmem:[#allocation4 + $0x370] sm:$0xff] }
  0x68   :  { %468 = vmatprep.subr.mxu0 %v294_v36  ;;  %v304_v36 = vld [vmem:[#allocation4 + $0x1d8] sm:$0xff] }
  0x69   :  { %469 = vmatpush2.msra.mxu0 %v293_v38  ;;  %v256_v38 = vld [vmem:[#allocation4 + $0x58] sm:$0xff] }
  0x6a   :  { %1016 = vmatprep.subr.mxu0 %v1166_v0 }
  0xea   :  { %v161_v50 = vpop.f32.mrf.mxu1 }
  0xeb   :  { %v162_v51 = vadd.f32 %v161_v50, %v79_v47  ;;  %v250_v47 = vld [vmem:[#allocation4 + $0x28] sm:$0xff]  ;;  %v343_v50 = vld [vmem:[#allocation4 + $0x310] sm:$0xff] }
  0xec   :  { %v163_v53 = vpop.f32.mrf.mxu1 }
  0xed   :  { %v164_v54 = vadd.f32 %v163_v53, %v83_v49  ;;  %v239_v55 = vmul.f32 0.01, %v162_v51  ;;  %vm236_vm3 = vcmp.ge.f32.partialorder %v162_v51, 0.0  ;;  %v295_v49 = vld [vmem:[#allocation4 + $0x190] sm:$0xff]  ;;  %v712_v53 = vld [vmem:[#allocation6 + $0x78] sm:$0xff] }
  0xef   :  { %v232_v56 = vpop.f32.mrf.mxu1  ;;  %vm237_vm2 = vcmp.ge.f32.partialorder %v164_v54, 0.0  ;;  %v240_v58 = vmul.f32 0.01, %v164_v54  ;;  %v1243_v63 = vsel %vm236_vm3, %v162_v51, %v239_v55  ;;  %v247_v51 = vld [vmem:[#allocation4 + $0x10] sm:$0xff] }
  0xf0   :  { %v233_v57 = vadd.f32 %v232_v56, %v87_v52  ;;  %v728_v52 = vld [vmem:[#allocation6 + $0xf8] sm:$0xff]  ;;  %v711_v55 = vld [vmem:[#allocation6 + $0x70] sm:$0xff]  ;;  %v726_v56 = vld [vmem:[#allocation6 + $0xe8] sm:$0xff] }
  0xf1   :  { %v1015_v59 = vpop.f32.mrf.mxu1  ;;  %v243_v61 = vsel %vm237_vm2, %v164_v54, %v240_v58  ;;  %v727_v54 = vld [vmem:[#allocation6 + $0xf0] sm:$0xff]  ;;  %v725_v58 = vld [vmem:[#allocation6 + $0xe0] sm:$0xff] }
  0xf2   :  { %vm238_vm4 = vcmp.ge.f32.partialorder %v233_v57, 0.0  ;;  %v241_v60 = vmul.f32 0.01, %v233_v57  ;;  %470 = vmatprep.mubr.f32.mxu0 %v243_v61  ;;  %v709_v59 = vld [vmem:[#allocation6 + $0x60] sm:$0xff] }
  0xf3   :  { %471 = vmatmul.mubr.f32.vlgmr.msra.gmra.mxu0 %v1243_v63 }
  0xf4   :  { %v1246_v2 = vsel %vm238_vm4, %v233_v57, %v241_v60  ;;  %1017 = vmatpush3.msra.mxu0 %v388_v62  ;;  %1048 = vmatprep.mubr.msk.f32.mxu0 %vm1167_vm1, %v1166_v0  ;;  %v710_v57 = vld [vmem:[#allocation6 + $0x68] sm:$0xff]  ;;  %v724_v60 = vld [vmem:[#allocation6 + $0xd8] sm:$0xff]  ;;  %v723_v62 = vld [vmem:[#allocation6 + $0xd0] sm:$0xff] }
  0xf5   :  { %542 = vmatmul.mubr.f32.vlgmr.msra.gmra.mxu1 %v1246_v2  ;;  %1018 = vmatprep.subr.mxu0 %v1166_v0 }
  0xf6   :  { %906 = vmatpush3.msra.mxu1 %v292_v1  ;;  %612 = vmatprep.mubr.f32.mxu1 %v243_v61  ;;  %v708_v61 = vld [vmem:[#allocation6 + $0x58] sm:$0xff]  ;;  %v722_v1 = vld [vmem:[#allocation6 + $0xc8] sm:$0xff] }
  0xf7   :  { %907 = vmatprep.subr.mxu1 %v337_v3  ;;  %1019 = vmatpush3.msra.mxu0 %v385_v4  ;;  %v721_v3 = vld [vmem:[#allocation6 + $0xc0] sm:$0xff] }
  0xf8   :  { %908 = vmatpush3.msra.mxu1 %v289_v5  ;;  %1020 = vmatprep.subr.mxu0 %v1166_v0  ;;  %v705_v4 = vld [vmem:[#allocation6 + $0x40] sm:$0xff]  ;;  %v720_v5 = vld [vmem:[#allocation6 + $0xb8] sm:$0xff] }
  0xf9   :  { %909 = vmatprep.subr.mxu1 %v334_v6  ;;  %1021 = vmatpush3.msra.mxu0 %v382_v7  ;;  %v704_v6 = vld [vmem:[#allocation6 + $0x38] sm:$0xff]  ;;  %v719_v7 = vld [vmem:[#allocation6 + $0xb0] sm:$0xff] }
  0xfa   :  { %910 = vmatpush3.msra.mxu1 %v286_v8  ;;  %1022 = vmatprep.subr.mxu0 %v1166_v0  ;;  %v703_v8 = vld [vmem:[#allocation6 + $0x30] sm:$0xff] }
  0xfb   :  { %911 = vmatprep.subr.mxu1 %v331_v9  ;;  %1023 = vmatpush3.msra.mxu0 %v379_v10  ;;  %v718_v9 = vld [vmem:[#allocation6 + $0xa8] sm:$0xff] }
  0xfc   :  { %912 = vmatpush3.msra.mxu1 %v283_v11  ;;  %1024 = vmatprep.subr.mxu0 %v1166_v0  ;;  %v702_v10 = vld [vmem:[#allocation6 + $0x28] sm:$0xff]  ;;  %v717_v11 = vld [vmem:[#allocation6 + $0xa0] sm:$0xff] }
  0xfd   :  { %913 = vmatprep.subr.mxu1 %v328_v12  ;;  %1025 = vmatpush3.msra.mxu0 %v376_v13  ;;  %v701_v12 = vld [vmem:[#allocation6 + $0x20] sm:$0xff]  ;;  %v716_v13 = vld [vmem:[#allocation6 + $0x98] sm:$0xff] }
  0xfe   :  { %914 = vmatpush3.msra.mxu1 %v280_v14  ;;  %1026 = vmatprep.subr.mxu0 %v1166_v0  ;;  %v700_v14 = vld [vmem:[#allocation6 + $0x18] sm:$0xff] }
  0xff   :  { %915 = vmatprep.subr.mxu1 %v325_v15  ;;  %1027 = vmatpush3.msra.mxu0 %v373_v16  ;;  %v715_v15 = vld [vmem:[#allocation6 + $0x90] sm:$0xff] }
 0x100   :  { %916 = vmatpush3.msra.mxu1 %v277_v17  ;;  %1028 = vmatprep.subr.mxu0 %v1166_v0  ;;  %v699_v16 = vld [vmem:[#allocation6 + $0x10] sm:$0xff]  ;;  %v714_v17 = vld [vmem:[#allocation6 + $0x88] sm:$0xff] }
 0x101   :  { %917 = vmatprep.subr.mxu1 %v322_v18  ;;  %1029 = vmatpush3.msra.mxu0 %v370_v19  ;;  %v698_v18 = vld [vmem:[#allocation6 + $0x8] sm:$0xff]  ;;  %v713_v19 = vld [vmem:[#allocation6 + $0x80] sm:$0xff] }
 0x102   :  { %918 = vmatpush3.msra.mxu1 %v274_v20  ;;  %1030 = vmatprep.subr.mxu0 %v1166_v0  ;;  %v697_v20 = vld [vmem:[#allocation6] sm:$0xff] }
 0x103   :  { %919 = vmatprep.subr.mxu1 %v319_v21  ;;  %1031 = vmatpush3.msra.mxu0 %v367_v22  ;;  %v744_v21 = vld [vmem:[#allocation6 + $0x178] sm:$0xff]  ;;  %v743_v22 = vld [vmem:[#allocation6 + $0x170] sm:$0xff] }
 0x104   :  { %920 = vmatpush3.msra.mxu1 %v271_v23  ;;  %1032 = vmatprep.subr.mxu0 %v1166_v0  ;;  %v742_v23 = vld [vmem:[#allocation6 + $0x168] sm:$0xff] }
 0x105   :  { %921 = vmatprep.subr.mxu1 %v316_v24  ;;  %1033 = vmatpush3.msra.mxu0 %v364_v25  ;;  %v741_v24 = vld [vmem:[#allocation6 + $0x160] sm:$0xff]  ;;  %v740_v25 = vld [vmem:[#allocation6 + $0x158] sm:$0xff] }
 0x106   :  { %922 = vmatpush3.msra.mxu1 %v268_v26  ;;  %1034 = vmatprep.subr.mxu0 %v1166_v0  ;;  %v739_v26 = vld [vmem:[#allocation6 + $0x150] sm:$0xff] }
 0x107   :  { %923 = vmatprep.subr.mxu1 %v313_v27  ;;  %1035 = vmatpush3.msra.mxu0 %v361_v28  ;;  %v738_v27 = vld [vmem:[#allocation6 + $0x148] sm:$0xff]  ;;  %v737_v28 = vld [vmem:[#allocation6 + $0x140] sm:$0xff] }
 0x108   :  { %924 = vmatpush3.msra.mxu1 %v265_v29  ;;  %1036 = vmatprep.subr.mxu0 %v1166_v0  ;;  %v736_v29 = vld [vmem:[#allocation6 + $0x138] sm:$0xff] }
 0x109   :  { %925 = vmatprep.subr.mxu1 %v310_v30  ;;  %1037 = vmatpush3.msra.mxu0 %v358_v31  ;;  %v735_v30 = vld [vmem:[#allocation6 + $0x130] sm:$0xff]  ;;  %v734_v31 = vld [vmem:[#allocation6 + $0x128] sm:$0xff] }
 0x10a   :  { %926 = vmatpush3.msra.mxu1 %v262_v32  ;;  %1038 = vmatprep.subr.mxu0 %v1166_v0  ;;  %v733_v32 = vld [vmem:[#allocation6 + $0x120] sm:$0xff] }
 0x10b   :  { %927 = vmatprep.subr.mxu1 %v307_v33  ;;  %1039 = vmatpush3.msra.mxu0 %v355_v34  ;;  %v732_v33 = vld [vmem:[#allocation6 + $0x118] sm:$0xff]  ;;  %v731_v34 = vld [vmem:[#allocation6 + $0x110] sm:$0xff] }
 0x10c   :  { %928 = vmatpush3.msra.mxu1 %v259_v35  ;;  %1040 = vmatprep.subr.mxu0 %v1166_v0  ;;  %v730_v35 = vld [vmem:[#allocation6 + $0x108] sm:$0xff] }
 0x10d   :  { %929 = vmatprep.subr.mxu1 %v304_v36  ;;  %1041 = vmatpush3.msra.mxu0 %v352_v37  ;;  %v729_v36 = vld [vmem:[#allocation6 + $0x100] sm:$0xff]  ;;  %v389_v37 = vld [vmem:[%s1305_s4] sm:$0x7] }
 0x10e   :  { %930 = vmatpush3.msra.mxu1 %v256_v38  ;;  %1042 = vmatprep.subr.mxu0 %v1166_v0  ;;  %v394_v38 = vrot.slane %v389_v37, %v78_v44 }
 0x10f   :  { %931 = vmatprep.subr.mxu1 %v301_v39  ;;  %1043 = vmatpush3.msra.mxu0 %v349_v40  ;;  %v398_v39 = vrot.slane %v389_v37, %v82_v46  ;;  %v402_v46 = vrot.slane %v389_v37, %v86_v48 }
 0x110   :  { %932 = vmatpush3.msra.mxu1 %v253_v41  ;;  %1044 = vmatprep.subr.mxu0 %v1166_v0 }
 0x111   :  { %933 = vmatprep.subr.mxu1 %v298_v42  ;;  %1045 = vmatpush3.msra.mxu0 %v346_v45 }
 0x112   :  { %934 = vmatpush3.msra.mxu1 %v250_v47  ;;  %1046 = vmatprep.subr.mxu0 %v1166_v0 }
 0x113   :  { %935 = vmatprep.subr.mxu1 %v295_v49  ;;  %1047 = vmatpush3.msra.mxu0 %v343_v50 }
 0x114   :  { %936 = vmatpush3.msra.mxu1 %v247_v51  ;;  %1049 = vmatmul.mubr.f32.vlgmr.msra.gmra.mxu0 %v1246_v2  ;;  %v706_v2 = vld [vmem:[#allocation6 + $0x48] sm:$0xff] }
 0x115   :  { %613 = vmatmul.mubr.f32.vlgmr.msra.gmra.mxu1 %v1243_v63  ;;  %957 = vmatprep.subr.mxu1 %v728_v52  ;;  %v707_v63 = vld [vmem:[#allocation6 + $0x50] sm:$0xff] }
 0x116   :  { %958 = vmatpush3.msra.mxu1 %v712_v53  ;;  %1051 = vmatprep.subr.mxu0 %v1166_v0 }
 0x117   :  { %959 = vmatprep.subr.mxu1 %v727_v54  ;;  %1083 = vmatprep.mubr.msk.f32.mxu0 %vm1167_vm1, %v1166_v0 }
 0x118   :  { %960 = vmatpush3.msra.mxu1 %v711_v55  ;;  %1052 = vmatpush3.msra.mxu0 %v744_v21 }
 0x119   :  { %961 = vmatprep.subr.mxu1 %v726_v56  ;;  %1053 = vmatprep.subr.mxu0 %v1166_v0 }
 0x11a   :  { %962 = vmatpush3.msra.mxu1 %v710_v57  ;;  %1054 = vmatpush3.msra.mxu0 %v743_v22 }
 0x11b   :  { %963 = vmatprep.subr.mxu1 %v725_v58  ;;  %1055 = vmatprep.subr.mxu0 %v1166_v0 }
 0x11c   :  { %964 = vmatpush3.msra.mxu1 %v709_v59  ;;  %1056 = vmatpush3.msra.mxu0 %v742_v23 }
 0x11d   :  { %965 = vmatprep.subr.mxu1 %v724_v60  ;;  %1057 = vmatprep.subr.mxu0 %v1166_v0 }
 0x11e   :  { %966 = vmatpush3.msra.mxu1 %v708_v61  ;;  %1058 = vmatpush3.msra.mxu0 %v741_v24 }
 0x11f   :  { %967 = vmatprep.subr.mxu1 %v723_v62  ;;  %1059 = vmatprep.subr.mxu0 %v1166_v0 }
 0x120   :  { %968 = vmatpush3.msra.mxu1 %v707_v63  ;;  %1060 = vmatpush3.msra.mxu0 %v740_v25 }
 0x121   :  { %969 = vmatprep.subr.mxu1 %v722_v1  ;;  %1061 = vmatprep.subr.mxu0 %v1166_v0 }
 0x122   :  { %970 = vmatpush3.msra.mxu1 %v706_v2  ;;  %1062 = vmatpush3.msra.mxu0 %v739_v26 }
 0x123   :  { %971 = vmatprep.subr.mxu1 %v721_v3  ;;  %1063 = vmatprep.subr.mxu0 %v1166_v0  ;;  %v901_v3 = vld [vmem:[%s1307_s6] ss:$0 sm:$0xff] }
 0x124   :  { %972 = vmatpush3.msra.mxu1 %v705_v4  ;;  %1064 = vmatpush3.msra.mxu0 %v738_v27 }
 0x125   :  { %973 = vmatprep.subr.mxu1 %v720_v5  ;;  %1065 = vmatprep.subr.mxu0 %v1166_v0 }
 0x126   :  { %974 = vmatpush3.msra.mxu1 %v704_v6  ;;  %1066 = vmatpush3.msra.mxu0 %v737_v28 }
 0x127   :  { %975 = vmatprep.subr.mxu1 %v719_v7  ;;  %1067 = vmatprep.subr.mxu0 %v1166_v0 }
 0x128   :  { %976 = vmatpush3.msra.mxu1 %v703_v8  ;;  %1068 = vmatpush3.msra.mxu0 %v736_v29 }
 0x129   :  { %977 = vmatprep.subr.mxu1 %v718_v9  ;;  %1069 = vmatprep.subr.mxu0 %v1166_v0 }
 0x12a   :  { %978 = vmatpush3.msra.mxu1 %v702_v10  ;;  %1070 = vmatpush3.msra.mxu0 %v735_v30 }
 0x12b   :  { %979 = vmatprep.subr.mxu1 %v717_v11  ;;  %1071 = vmatprep.subr.mxu0 %v1166_v0 }
 0x12c   :  { %980 = vmatpush3.msra.mxu1 %v701_v12  ;;  %1072 = vmatpush3.msra.mxu0 %v734_v31 }
 0x12d   :  { %981 = vmatprep.subr.mxu1 %v716_v13  ;;  %1073 = vmatprep.subr.mxu0 %v1166_v0 }
 0x12e   :  { %982 = vmatpush3.msra.mxu1 %v700_v14  ;;  %1074 = vmatpush3.msra.mxu0 %v733_v32 }
 0x12f   :  { %983 = vmatprep.subr.mxu1 %v715_v15  ;;  %1075 = vmatprep.subr.mxu0 %v1166_v0 }
 0x130   :  { %984 = vmatpush3.msra.mxu1 %v699_v16  ;;  %1076 = vmatpush3.msra.mxu0 %v732_v33 }
 0x131   :  { %985 = vmatprep.subr.mxu1 %v714_v17  ;;  %1077 = vmatprep.subr.mxu0 %v1166_v0 }
 0x132   :  { %986 = vmatpush3.msra.mxu1 %v698_v18  ;;  %1078 = vmatpush3.msra.mxu0 %v731_v34 }
 0x133   :  { %987 = vmatprep.subr.mxu1 %v713_v19  ;;  %1079 = vmatprep.subr.mxu0 %v1166_v0 }
 0x134   :  { %988 = vmatpush3.msra.mxu1 %v697_v20  ;;  %1080 = vmatpush3.msra.mxu0 %v730_v35 }
 0x135   :  { %1081 = vmatprep.subr.mxu0 %v1166_v0 }
 0x136   :  { %1082 = vmatpush3.msra.mxu0 %v729_v36 }
 0x1b3   :  { %v472_v40 = vpop.f32.mrf.mxu0 }
 0x1b4   :  { %v473_v41 = vadd.f32 %v472_v40, %v394_v38 }
 0x1b5   :  { %v543_v42 = vpop.f32.mrf.mxu1  ;;  %v474_v45 = vpop.f32.mrf.mxu0 }
 0x1b6   :  { %v544_v47 = vadd.f32 %v543_v42, %v473_v41  ;;  %v475_v49 = vadd.f32 %v474_v45, %v398_v39 }
 0x1b7   :  { %v545_v50 = vpop.f32.mrf.mxu1 }
 0x1b8   :  { %v546_v51 = vadd.f32 %v545_v50, %v475_v49  ;;  %v691_v0 = vmul.f32 0.01, %v544_v47  ;;  %vm688_vm5 = vcmp.ge.f32.partialorder %v544_v47, 0.0 }
 0x1ba   :  { %v692_v52 = vmul.f32 0.01, %v546_v51  ;;  %vm689_vm6 = vcmp.ge.f32.partialorder %v546_v51, 0.0  ;;  %v694_v54 = vsel %vm688_vm5, %v544_v47, %v691_v0 }
 0x1bc   :  { %v695_v53 = vsel %vm689_vm6, %v546_v51, %v692_v52 }
 0x1bd   :  { %816 = vmatprep.mubr.f32.mxu1 %v695_v53 }
 0x1be   :  { %817 = vmatmul.mubr.f32.vlgmr.msra.gmra.mxu1 %v694_v54 }
 0x1d4   :  { %v684_v44 = vpop.f32.mrf.mxu0 }
 0x1d5   :  { %v937_v55 = vpop.f32.mrf.mxu1 }
 0x1d6   :  { %v1050_v56 = vpop.f32.mrf.mxu0 }
 0x1d7   :  { %v938_v57 = vpop.f32.mrf.mxu1 }
 0x1d8   :  { %v939_v58 = vadd.f32 %v938_v57, %v937_v55 }
 0x1da   :  { %v615_v59 = vadd.f32 %v939_v58, %v402_v46 }
 0x1dc   :  { %v685_v60 = vadd.f32 %v684_v44, %v615_v59 }
 0x1de   :  { %vm690_vm7 = vcmp.ge.f32.partialorder %v685_v60, 0.0  ;;  %v693_v61 = vmul.f32 0.01, %v685_v60 }
 0x1e0   :  { %v696_v62 = vsel %vm690_vm7, %v685_v60, %v693_v61 }
 0x1e1   :  { %1084 = vmatmul.mubr.f32.vlgmr.msra.gmra.mxu0 %v696_v62 }
 0x27e   :  { %v989_v63 = vpop.f32.mrf.mxu1 }
 0x280   :  { %v990_v1 = vpop.f32.mrf.mxu1 }
 0x281   :  { %v991_v2 = vadd.f32 %v990_v1, %v989_v63 }
 0x283   :  { %v819_v4 = vadd.f32 %v991_v2, %v901_v3 }
 0x2a1   :  { %v888_v5 = vpop.f32.mrf.mxu0 }
 0x2a2   :  { %v889_v6 = vadd.f32 %v888_v5, %v819_v4 }
 0x2a3   :  { %v1085_v43 = vpop.f32.mrf.mxu0 }
 0x2a4   :  { %892 = vst [vmem:[%s1308_s7] sm:$0xff] %v889_v6 }
 0x2a5   :  { %897 = vsyncpa [#allocation3], 1 }
 0x2a6   :  { %898 = vsyncpa [#allocation5], 1 }

</bundles_post_ra>
